<compile_context>
chip_gen: v5e
topology: v5e:2x2
jax: 0.10.0
libtpu: 0.0.40
codegen_flags: <defaults>
</compile_context>

<pallas_src>
import functools
import math

import jax
import jax.numpy as jnp
from jax.experimental import pallas as pl
from jax.experimental.pallas import tpu as pltpu


_LANES = 512            # lane-dense last dim (multiple of 128)
_MAX_TILE_ROWS = 1024   # 1024 * 512 * 4 B = 2 MiB per f32 block buffer


def _round_up(x, m):
    return (x + m - 1) // m * m


# ---------------------------------------------------------------------------
# TPU path: in-kernel hardware PRNG + Box-Muller (uses both outputs).
# ---------------------------------------------------------------------------
def _uniform_1_2(bits):
    # uint32 random bits -> float32 uniform in [1, 2) via the mantissa trick.
    u32 = pltpu.bitcast(bits, jnp.uint32)
    return pltpu.bitcast((u32 >> 9) | jnp.uint32(0x3F800000), jnp.float32)


def _std_normal_pair(shape):
    """Two independent N(0,1) arrays of `shape` from one Box-Muller pass."""
    f1 = _uniform_1_2(pltpu.prng_random_bits(shape))
    f2 = _uniform_1_2(pltpu.prng_random_bits(shape))
    u1 = 2.0 - f1                       # (0, 1], safe for log
    theta = (2.0 * math.pi) * (f2 - 1.0)  # f2 - 1 in [0, 1)
    r = jnp.sqrt(-2.0 * jnp.log(u1))
    return r * jnp.cos(theta), r * jnp.sin(theta)


def _random_noise_prng_kernel(seed_ref, x_ref, o_ref, *, noise_std):
    # Per-block seed: independent streams across grid steps / TensorCores.
    pltpu.prng_seed(seed_ref[0], pl.program_id(0))

    rows, cols = x_ref.shape
    half = cols // 2                    # cols is a multiple of 256
    z1, z2 = _std_normal_pair((rows, half))

    x_lo = x_ref[:, :half].astype(jnp.float32)
    x_hi = x_ref[:, half:].astype(jnp.float32)
    o_ref[:, :half] = (x_lo + noise_std * z1).astype(o_ref.dtype)
    o_ref[:, half:] = (x_hi + noise_std * z2).astype(o_ref.dtype)


# ---------------------------------------------------------------------------
# Portable fallback path: noise precomputed outside, kernel fuses scale + add.
# ---------------------------------------------------------------------------
def _random_noise_add_kernel(x_ref, n_ref, o_ref, *, noise_std):
    x = x_ref[...].astype(jnp.float32)
    o_ref[...] = (x + noise_std * n_ref[...]).astype(o_ref.dtype)


# ---------------------------------------------------------------------------
# Wrapper
# ---------------------------------------------------------------------------
def random_noise(img, seed, noise_std=0.05):
    """Equivalent of RandomNoise.forward: img + randn_like(img) * noise_std."""
    orig_shape = img.shape
    orig_dtype = img.dtype
    n = img.size

    lanes = _LANES
    rows = _round_up(n, lanes) // lanes
    tile_r = min(_MAX_TILE_ROWS, _round_up(rows, 8))
    rows_pad = _round_up(rows, tile_r)
    n_pad = rows_pad * lanes
    grid = (rows_pad // tile_r,)

    x_flat = img.reshape(-1)
    if n_pad != n:
        x_flat = jnp.pad(x_flat, (0, n_pad - n))
    x2d = x_flat.reshape(rows_pad, lanes)

    on_tpu = jax.default_backend() == "tpu"

    if on_tpu:
        seed_arr = jnp.asarray([seed], dtype=jnp.int32)
        kernel = functools.partial(_random_noise_prng_kernel,
                                   noise_std=float(noise_std))
        out2d = pl.pallas_call(
            kernel,
            out_shape=jax.ShapeDtypeStruct((rows_pad, lanes), orig_dtype),
            grid_spec=pltpu.PrefetchScalarGridSpec(
                num_scalar_prefetch=1,
                grid=grid,
                in_specs=[pl.BlockSpec((tile_r, lanes), lambda i, seed: (i, 0))],
                out_specs=pl.BlockSpec((tile_r, lanes), lambda i, seed: (i, 0)),
            ),
            compiler_params=pltpu.CompilerParams(
                dimension_semantics=("parallel",)),
            cost_estimate=pl.CostEstimate(
                flops=12 * n_pad,
                transcendentals=2 * n_pad,
                bytes_accessed=2 * n_pad * jnp.dtype(orig_dtype).itemsize),
        )(seed_arr, x2d)
    else:
        # Non-TPU / interpret fallback: pltpu PRNG has no CPU lowering, so the
        # Gaussian noise is generated with jax.random and fused in-kernel.
        noise2d = jax.random.normal(jax.random.PRNGKey(seed),
                                    (rows_pad, lanes), dtype=jnp.float32)
        kernel = functools.partial(_random_noise_add_kernel,
                                   noise_std=float(noise_std))
        out2d = pl.pallas_call(
            kernel,
            out_shape=jax.ShapeDtypeStruct((rows_pad, lanes), orig_dtype),
            grid=grid,
            in_specs=[pl.BlockSpec((tile_r, lanes), lambda i: (i, 0)),
                      pl.BlockSpec((tile_r, lanes), lambda i: (i, 0))],
            out_specs=pl.BlockSpec((tile_r, lanes), lambda i: (i, 0)),
        )(x2d, noise2d)

    out = out2d.reshape(-1)
    if n_pad != n:
        out = out[:n]
    return out.reshape(orig_shape)


if __name__ == "__main__":
    key = jax.random.PRNGKey(0)
    # NCHW, matching the torch module's typical image input
    x = jax.random.normal(key, (2, 4, 16, 16), dtype=jnp.float32)

    out = jax.block_until_ready(random_noise(x, seed=1234, noise_std=0.05))

    assert out.shape == x.shape and out.dtype == x.dtype

    # Sanity: residual should be zero-mean noise with std ~= 0.05
    resid = out - x
    std = float(jnp.std(resid))
    mean = float(jnp.mean(resid))
    assert 0.02 < std < 0.09, f"noise std off: {std}"
    assert abs(mean) < 0.02, f"noise mean off: {mean}"

    print("KERNEL_OK")
</pallas_src>

<mosaic_0001>
module attributes {stable_mosaic.version = 11 : i64} {
  func.func @_random_noise_add_kernel(%arg0: i32, %arg1: memref<8x512xf32, #tpu.memory_space<vmem>>, %arg2: memref<8x512xf32, #tpu.memory_space<vmem>>, %arg3: memref<8x512xf32, #tpu.memory_space<vmem>>) attributes {dimension_semantics = [#tpu.dimension_semantics<arbitrary>], iteration_bounds = array<i64: 1>, scalar_prefetch = 0 : i64, scratch_operands = 0 : i64, tpu.core_type = #tpu.core_type<tc>, window_params = [{transform_indices = @transform_0, window_bounds = array<i64: 8, 512>}, {transform_indices = @transform_1, window_bounds = array<i64: 8, 512>}, {transform_indices = @transform_2, window_bounds = array<i64: 8, 512>}]} {
    %c0 = arith.constant 0 : index
    %c0_0 = arith.constant 0 : index
    %0 = vector.load %arg1[%c0, %c0_0] : memref<8x512xf32, #tpu.memory_space<vmem>>, vector<8x512xf32>
    %c0_1 = arith.constant 0 : index
    %c0_2 = arith.constant 0 : index
    %1 = vector.load %arg2[%c0_1, %c0_2] : memref<8x512xf32, #tpu.memory_space<vmem>>, vector<8x512xf32>
    %cst = arith.constant 5.000000e-02 : f32
    %2 = vector.broadcast %cst : f32 to vector<8x512xf32>
    %3 = arith.mulf %2, %1 : vector<8x512xf32>
    %4 = arith.addf %0, %3 : vector<8x512xf32>
    %c0_3 = arith.constant 0 : index
    %c0_4 = arith.constant 0 : index
    %5 = vector.load %arg3[%c0_3, %c0_4] : memref<8x512xf32, #tpu.memory_space<vmem>>, vector<8x512xf32>
    tpu.vector_store %arg3[%c0_3, %c0_4], %4 {strides = array<i32>} : memref<8x512xf32, #tpu.memory_space<vmem>>, vector<8x512xf32>,
    return
  }
  func.func @transform_0(%arg0: i32) -> (i32, i32) {
    %c0_i32 = arith.constant 0 : i32
    %c0_i32_0 = arith.constant 0 : i32
    return %arg0, %c0_i32 : i32, i32
  }
  func.func @transform_1(%arg0: i32) -> (i32, i32) {
    %c0_i32 = arith.constant 0 : i32
    %c0_i32_0 = arith.constant 0 : i32
    return %arg0, %c0_i32 : i32, i32
  }
  func.func @transform_2(%arg0: i32) -> (i32, i32) {
    %c0_i32 = arith.constant 0 : i32
    %c0_i32_0 = arith.constant 0 : i32
    return %arg0, %c0_i32 : i32, i32
  }
}

</mosaic_0001>

<bundles_post_ra>
// kernel: tpu_custom_call.1
= control target key start
LH: loop header
LB: loop body
LE: loop exit
PB: predicated region body
PF: predicated region fallthrough
CT: control target
= control target key end

     0   :  { %7 = vsyncpa [#allocation3], 0  ;;  %s186_s0 = inlined_call_operand.hbm [shape: f32[8,512], index: 0, kind: input, shape index: {}]   ;;  %s187_s1 = inlined_call_operand.hbm [shape: f32[8,512], index: 1, kind: input, shape index: {}]   ;;  %s188_s2 = inlined_call_operand.hbm [shape: f32[8,512], index: 2, kind: output, shape index: {}]  }
   0x1   :  { %8 = vsyncpa [#allocation6], 0 }
   0x2   :  { %9 = vsyncpa [#allocation4], 0  ;;  %s15_s11 = sshll.u32 %s186_s0, 4  ;;  %s159_s12 = smov [#allocation2]   ;;  %s16_s11 = int_to_ptr.hbm [resolvable:$true] %s15_s11 }
   0x3   :  { %s17_s13 = sshll.u32 %s159_s12, 4  ;;  %s26_s16 = sshll.u32 %s187_s1, 4  ;;  %s18_s13 = int_to_ptr.vmem [resolvable:$true] %s17_s13  ;;  %s27_s16 = int_to_ptr.hbm [resolvable:$true] %s26_s16 }
   0x4   :  { %20 = dma.hbm_to_vmem [thread:$0]  %s16_s11, 512, %s18_s13, [#allocation3]  }
   0x5   :  { %s160_s17 = smov [#allocation5]  }
   0x6   :  { %s28_s18 = sshll.u32 %s160_s17, 4  ;;  %s29_s18 = int_to_ptr.vmem [resolvable:$true] %s28_s18 }
   0x7   :  { %31 = dma.hbm_to_vmem [thread:$0]  %s27_s16, 512, %s29_s18, [#allocation6]  }
   0x8   :  { %153 = dma.done.wait [#allocation3], 512  }
   0x9   :  { %154 = vsyncadd [#allocation3], 4294966784 }
   0xa   :  { %155 = dma.done.wait [#allocation6], 512  }
   0xb   :  { %156 = vsyncadd [#allocation6], 4294966784  ;;  %v40_v0 = vld [vmem:[#allocation2] sm:$0xff]  ;;  %v41_v2 = vld [vmem:[#allocation2 + $0x8] sm:$0xff]  ;;  %s161_s0 = smov [#allocation7]   ;;  %s67_s21 = sshll.u32 %s188_s2, 4  ;;  %s68_s21 = int_to_ptr.hbm [resolvable:$true] %s67_s21 }
   0xc   :  { %v44_v1 = vld [vmem:[#allocation5] sm:$0xff]  ;;  %v45_v4 = vld [vmem:[#allocation5 + $0x8] sm:$0xff]  ;;  %v42_v5 = vld [vmem:[#allocation2 + $0x10] sm:$0xff]  ;;  %s65_s1 = sshll.u32 %s161_s0, 4  ;;  %s66_s1 = int_to_ptr.vmem [resolvable:$true] %s65_s1 }
   0xd   :  { %v48_v3 = vmul.f32 0.05, %v44_v1  ;;  %v46_v6 = vld [vmem:[#allocation5 + $0x10] sm:$0xff]  ;;  %v49_v7 = vmul.f32 0.05, %v45_v4  ;;  %v43_v9 = vld [vmem:[#allocation2 + $0x18] sm:$0xff] }
   0xe   :  { %v50_v8 = vmul.f32 0.05, %v46_v6  ;;  %v47_v10 = vld [vmem:[#allocation5 + $0x18] sm:$0xff] }
   0xf   :  { %v52_v11 = vadd.f32 %v48_v3, %v40_v0  ;;  %v51_v12 = vmul.f32 0.05, %v47_v10  ;;  %v53_v13 = vadd.f32 %v49_v7, %v41_v2 }
  0x10   :  { %v54_v14 = vadd.f32 %v50_v8, %v42_v5 }
  0x11   :  { %56 = vst [vmem:[#allocation7] sm:$0xff] %v52_v11  ;;  %v55_v15 = vadd.f32 %v51_v12, %v43_v9 }
  0x12   :  { %57 = vst [vmem:[#allocation7 + $0x8] sm:$0xff] %v53_v13 }
  0x13   :  { %58 = vst [vmem:[#allocation7 + $0x10] sm:$0xff] %v54_v14 }
  0x14   :  { %59 = vst [vmem:[#allocation7 + $0x18] sm:$0xff] %v55_v15 }
  0x15   :  { %70 = dma.vmem_to_hbm [thread:$0]  %s66_s1, 512, %s68_s21, [#allocation4]  }
  0x16   :  { %157 = dma.done.wait [#allocation4], 512  }
  0x17   :  { %158 = vsyncadd [#allocation4], 4294966784 }
  0x18   :  { %75 = vsyncpa [#allocation3], 1 }
  0x19   :  { %76 = vsyncpa [#allocation6], 1 }
  0x1a   :  { %77 = vsyncpa [#allocation4], 1 }

</bundles_post_ra>
